<compile_context>
chip_gen: v7x
topology: tpu7x:2x2x1
jax: 0.10.0
libtpu: 0.0.40
codegen_flags: <defaults>
</compile_context>

<pallas_src>
import jax
import jax.numpy as jnp
from jax.experimental import pallas as pl
from jax.experimental.pallas import tpu as pltpu


_VMEM_LIMIT_BYTES = 32 * 1024 * 1024   # >= v5e default (16 MiB), == v6e/v7x default
_FUSED_ONEHOT_ELEMS = 512 * 1024       # cap on N*TE for the in-kernel one-hot gather


def _round_up(x: int, m: int) -> int:
    return ((x + m - 1) // m) * m


def _cdiv(a: int, b: int) -> int:
    return -(-a // b)


def _pick_lane_tile(n_items: int, tile: int, *, min_grid: int = 4):
    """Pick (lane_tile, padded_length), both multiples of 128.

    Goals: tiles as large as `tile` (amortize the ~0.35us per-grid-step
    overhead), >= min_grid steps once the problem is big enough (so the single
    'parallel' axis shards across v7x's 2 TensorCores), and near-equal tiles so
    padding waste is < 128 lanes per grid step (no round_up(e, te) blow-up).
    """
    nblk = _round_up(max(int(n_items), 1), 128) // 128
    cap = max(1, int(tile) // 128)
    if nblk >= 4 * min_grid:                       # only for non-trivial sizes
        cap = min(cap, max(1, nblk // min_grid))
    steps = _cdiv(nblk, cap)
    te_blk = _cdiv(nblk, steps)
    te = te_blk * 128
    return te, steps * te


# ----------------------------------------------------------------------------
# Kernel bodies
# ----------------------------------------------------------------------------
def _merge_mlp_store(f1, f2, wsum_ref, wdiff_ref, b1_ref, w2_ref, b2_ref, o_ref):
    """mean/max/min merge of two (C, TE) blocks + 2-layer MLP (transposed).

    Algebraic fold of `concat([mean, max, min], -1) @ w1.T`:
      mean = s/2, max = (s+d)/2, min = (s-d)/2  with s = f1+f2, d = |f1-f2|
      => h = Wsum @ s + Wdiff @ d + b1   (Wsum/Wdiff folded in the wrapper).
    """
    s = f1 + f2                                   # (C, TE)
    d = jnp.abs(f1 - f2)
    h = (jnp.dot(wsum_ref[...], s, preferred_element_type=jnp.float32)
         + jnp.dot(wdiff_ref[...], d, preferred_element_type=jnp.float32)
         + b1_ref[...])                           # (H, TE) f32
    h = jnp.maximum(h, 0.0)                       # ReLU (dropout == id at eval)
    out = (jnp.dot(w2_ref[...], h.astype(w2_ref.dtype),
                   preferred_element_type=jnp.float32)
           + b2_ref[...])                         # (O_pad, TE) f32
    o_ref[...] = out.astype(o_ref.dtype)          # lane-dense store


def _edge_fused_kernel(col_ref, row_ref, embt_ref, wsum_ref, wdiff_ref,
                       b1_ref, w2_ref, b2_ref, o_ref):
    """Gather both endpoint embeddings in-kernel (one-hot matmul on the MXU),
    then merge + MLP.  emb stays VMEM-resident; only int32 edge ids stream in.
    One-hots are built in the embedding dtype (bf16 emb => bf16 one-hots, 0/1
    exact, half the on-chip footprint); the MXU still accumulates in f32."""
    embt = embt_ref[...]                                      # (C, N8)
    n = embt.shape[1]
    te = col_ref.shape[1]
    node_ids = jax.lax.broadcasted_iota(jnp.int32, (n, te), 0)
    oh1 = (node_ids == col_ref[...]).astype(embt.dtype)       # (N8, TE)
    oh2 = (node_ids == row_ref[...]).astype(embt.dtype)
    f1 = jnp.dot(embt, oh1, preferred_element_type=jnp.float32).astype(embt.dtype)
    f2 = jnp.dot(embt, oh2, preferred_element_type=jnp.float32).astype(embt.dtype)
    _merge_mlp_store(f1, f2, wsum_ref, wdiff_ref, b1_ref, w2_ref, b2_ref, o_ref)


def _edge_pregathered_kernel(f1t_ref, f2t_ref, wsum_ref, wdiff_ref,
                             b1_ref, w2_ref, b2_ref, o_ref):
    """Fallback when the node table is too large to keep in VMEM: features are
    gathered by XLA in the wrapper and streamed in as (C, TE) blocks."""
    _merge_mlp_store(f1t_ref[...], f2t_ref[...], wsum_ref, wdiff_ref,
                     b1_ref, w2_ref, b2_ref, o_ref)


def _mlp_t_kernel(xt_ref, w1_ref, b1_ref, w2_ref, b2_ref, o_ref):
    """Plain 2-layer MLP (assign_edge=False path), transposed layout."""
    h = (jnp.dot(w1_ref[...], xt_ref[...], preferred_element_type=jnp.float32)
         + b1_ref[...])
    h = jnp.maximum(h, 0.0)
    out = (jnp.dot(w2_ref[...], h.astype(w2_ref.dtype),
                   preferred_element_type=jnp.float32)
           + b2_ref[...])
    o_ref[...] = out.astype(o_ref.dtype)


# ----------------------------------------------------------------------------
# Wrappers
# ----------------------------------------------------------------------------
def _edge_forward(emb, edge_index, params, *, tile, max_fused_nodes):
    w1, b1, w2, b2 = params
    n, c = emb.shape
    hid = w1.shape[0]
    o = w2.shape[0]
    assert w1.shape[1] == 3 * c, "assign_edge=True expects w1 of shape (H, 3*C)"

    col = edge_index[0].astype(jnp.int32)
    row = edge_index[1].astype(jnp.int32)
    e = col.shape[0]

    fused = n <= max_fused_nodes
    eff_tile = tile
    if fused:
        # Bound the (N, TE) one-hot intermediates (VMEM / vreg-spill budget).
        eff_tile = min(tile, max(128, (_FUSED_ONEHOT_ELEMS // max(n, 1)) // 128 * 128))
    te, e_pad = _pick_lane_tile(e, eff_tile)
    grid = (e_pad // te,)

    wdt = emb.dtype
    o_pad = max(8, _round_up(o, 8))
    # Fold the mean/max/min column blocks of w1 (see _merge_mlp_store).
    w1a, w1b, w1c = w1[:, :c], w1[:, c:2 * c], w1[:, 2 * c:]
    wsum = ((w1a + w1b + w1c) * 0.5).astype(wdt)
    wdiff = ((w1b - w1c) * 0.5).astype(wdt)
    b1c = jnp.reshape(b1, (hid, 1)).astype(jnp.float32)
    w2p = jnp.pad(w2, ((0, o_pad - o), (0, 0))).astype(wdt)
    b2p = jnp.pad(jnp.reshape(b2, (o, 1)).astype(jnp.float32),
                  ((0, o_pad - o), (0, 0)))
    weight_args = (wsum, wdiff, b1c, w2p, b2p)

    const = lambda i: (0, 0)
    weight_specs = [
        pl.BlockSpec((hid, c), const),      # Wsum
        pl.BlockSpec((hid, c), const),      # Wdiff
        pl.BlockSpec((hid, 1), const),      # b1
        pl.BlockSpec((o_pad, hid), const),  # w2 (rows zero-padded to mult of 8)
        pl.BlockSpec((o_pad, 1), const),    # b2
    ]
    out_spec = pl.BlockSpec((o_pad, te), lambda i: (0, i))
    out_shape = jax.ShapeDtypeStruct((o_pad, e_pad), emb.dtype)
    cparams = pltpu.CompilerParams(dimension_semantics=("parallel",),
                                   vmem_limit_bytes=_VMEM_LIMIT_BYTES)

    if fused:
        # Fused gather: only edge ids + emb (once) + logits touch HBM.
        n8 = _round_up(n, 8)
        embt = jnp.pad(emb, ((0, n8 - n), (0, 0))).T          # (C, N8)
        col_p = jnp.pad(col, (0, e_pad - e)).reshape(1, e_pad)
        row_p = jnp.pad(row, (0, e_pad - e)).reshape(1, e_pad)
        out_t = pl.pallas_call(
            _edge_fused_kernel,
            out_shape=out_shape,
            grid_spec=pltpu.PrefetchScalarGridSpec(
                num_scalar_prefetch=0,
                grid=grid,
                in_specs=[
                    pl.BlockSpec((1, te), lambda i: (0, i)),   # col ids (lane-dense)
                    pl.BlockSpec((1, te), lambda i: (0, i)),   # row ids
                    pl.BlockSpec((c, n8), lambda i: (0, 0)),   # emb.T, VMEM-resident
                ] + weight_specs,
                out_specs=out_spec,
            ),
            compiler_params=cparams,
        )(col_p, row_p, embt, *weight_args)
    else:
        # TODO(synk): the XLA gather + .T costs ~2 extra HBM passes over E*C
        # data; gathering straight into (C, E) layout or a manual in-kernel DMA
        # row-gather would remove them, but in-kernel transposes of (TE, C)
        # blocks with C << 128 are not reliably lowered, so keep the known-good
        # XLA gather here.
        col_p = jnp.pad(col, (0, e_pad - e))
        row_p = jnp.pad(row, (0, e_pad - e))
        f1t = jnp.take(emb, col_p, axis=0).T                   # (C, E_pad)
        f2t = jnp.take(emb, row_p, axis=0).T
        out_t = pl.pallas_call(
            _edge_pregathered_kernel,
            out_shape=out_shape,
            grid_spec=pltpu.PrefetchScalarGridSpec(
                num_scalar_prefetch=0,
                grid=grid,
                in_specs=[
                    pl.BlockSpec((c, te), lambda i: (0, i)),
                    pl.BlockSpec((c, te), lambda i: (0, i)),
                ] + weight_specs,
                out_specs=out_spec,
            ),
            compiler_params=cparams,
        )(f1t, f2t, *weight_args)

    return out_t[:o, :e].T                                     # (E, O)


def _plain_forward(emb, params, *, tile):
    w1, b1, w2, b2 = params
    r, c = emb.shape
    hid = w1.shape[0]
    o = w2.shape[0]
    assert w1.shape[1] == c

    tr, r_pad = _pick_lane_tile(r, tile)
    o_pad = max(8, _round_up(o, 8))
    wdt = emb.dtype

    xt = jnp.pad(emb, ((0, r_pad - r), (0, 0))).T              # (C, R_pad)
    w1c = w1.astype(wdt)
    b1c = jnp.reshape(b1, (hid, 1)).astype(jnp.float32)
    w2p = jnp.pad(w2, ((0, o_pad - o), (0, 0))).astype(wdt)
    b2p = jnp.pad(jnp.reshape(b2, (o, 1)).astype(jnp.float32),
                  ((0, o_pad - o), (0, 0)))
    const = lambda i: (0, 0)

    out_t = pl.pallas_call(
        _mlp_t_kernel,
        out_shape=jax.ShapeDtypeStruct((o_pad, r_pad), emb.dtype),
        grid_spec=pltpu.PrefetchScalarGridSpec(
            num_scalar_prefetch=0,
            grid=(r_pad // tr,),
            in_specs=[
                pl.BlockSpec((c, tr), lambda i: (0, i)),
                pl.BlockSpec((hid, c), const),
                pl.BlockSpec((hid, 1), const),
                pl.BlockSpec((o_pad, hid), const),
                pl.BlockSpec((o_pad, 1), const),
            ],
            out_specs=pl.BlockSpec((o_pad, tr), lambda i: (0, i)),
        ),
        compiler_params=pltpu.CompilerParams(
            dimension_semantics=("parallel",),
            vmem_limit_bytes=_VMEM_LIMIT_BYTES),
    )(xt, w1c, b1c, w2p, b2p)
    return out_t[:o, :r].T


def assigner_mlp_forward(emb, edge_index, params, *, assign_edge,
                         tile=4096, max_fused_nodes=128):
    """Equivalent of AssignerMLP.forward(emb, edge_index) (eval mode)."""
    tile = _round_up(tile, 128)
    if assign_edge:
        return _edge_forward(emb, edge_index, params, tile=tile,
                             max_fused_nodes=max_fused_nodes)
    return _plain_forward(emb, params, tile=tile)


# ----------------------------------------------------------------------------
# Reference + demo
# ----------------------------------------------------------------------------
def _make_params(key, in_dim, hidden, out_dim):
    """PyTorch nn.Linear layout: w is (out_features, in_features)."""
    k1, k2, k3, k4 = jax.random.split(key, 4)
    w1 = jax.random.normal(k1, (hidden, in_dim), jnp.float32) * 0.1
    b1 = jax.random.normal(k2, (hidden,), jnp.float32) * 0.01
    w2 = jax.random.normal(k3, (out_dim, hidden), jnp.float32) * 0.1
    b2 = jax.random.normal(k4, (out_dim,), jnp.float32) * 0.01
    return w1, b1, w2, b2


def _ref_mlp(x, params):
    w1, b1, w2, b2 = params
    h = jnp.maximum(x @ w1.T + b1, 0.0)
    return h @ w2.T + b2


def _ref_edge(emb, edge_index, params):
    col, row = edge_index[0], edge_index[1]
    f1, f2 = emb[col], emb[row]
    merged = jnp.stack([f1, f2], axis=0)
    x = jnp.concatenate(
        [merged.mean(axis=0), merged.max(axis=0), merged.min(axis=0)], axis=-1)
    return _ref_mlp(x, params)


if __name__ == "__main__":
    key = jax.random.PRNGKey(0)
    k_emb, k_edge, k_p1, k_p2 = jax.random.split(key, 4)

    N, C = 16, 8           # nodes, embedding channels
    E = 200                # edges (deliberately NOT a multiple of the tile)
    HIDDEN, OUT = 32, 2    # channels = [C, HIDDEN, OUT]

    emb = jax.random.normal(k_emb, (N, C), jnp.float32)
    edge_index = jax.random.randint(k_edge, (2, E), 0, N, jnp.int32)

    # assign_edge=True  => channels[0] * 3 ; assign_edge=False => channels[0] = C
    params_edge = _make_params(k_p1, 3 * C, HIDDEN, OUT)
    params_plain = _make_params(k_p2, C, HIDDEN, OUT)

    # Fused in-kernel gather, single tile (default big-tile path).
    out_edge = jax.block_until_ready(
        assigner_mlp_forward(emb, edge_index, params_edge, assign_edge=True))
    # Fused gather, multi-tile grid (exercises the tile-picker remainder path).
    out_edge_mt = jax.block_until_ready(
        assigner_mlp_forward(emb, edge_index, params_edge, assign_edge=True,
                             tile=128))
    # Pre-gathered fallback path (large-node-table branch), multi-tile.
    out_edge_nf = jax.block_until_ready(
        assigner_mlp_forward(emb, edge_index, params_edge, assign_edge=True,
                             tile=128, max_fused_nodes=0))
    # Plain-MLP path.
    out_plain = jax.block_until_ready(
        assigner_mlp_forward(emb, edge_index, params_plain, assign_edge=False))

    ref_e = _ref_edge(emb, edge_index, params_edge)
    ref_p = _ref_mlp(emb, params_plain)

    assert out_edge.shape == (E, OUT)
    assert out_plain.shape == (N, OUT)
    assert jnp.allclose(out_edge, ref_e, atol=2e-5, rtol=2e-5)
    assert jnp.allclose(out_edge_mt, ref_e, atol=2e-5, rtol=2e-5)
    assert jnp.allclose(out_edge_nf, ref_e, atol=2e-5, rtol=2e-5)
    assert jnp.allclose(out_plain, ref_p, atol=2e-5, rtol=2e-5)

    print("KERNEL_OK")
</pallas_src>

<mosaic_0001>
module attributes {stable_mosaic.version = 11 : i64} {
  func.func @_edge_fused_kernel(%arg0: i32, %arg1: memref<1x256xi32, #tpu.memory_space<vmem>>, %arg2: memref<1x256xi32, #tpu.memory_space<vmem>>, %arg3: memref<8x16xf32, #tpu.memory_space<vmem>>, %arg4: memref<32x8xf32, #tpu.memory_space<vmem>>, %arg5: memref<32x8xf32, #tpu.memory_space<vmem>>, %arg6: memref<32x1xf32, #tpu.memory_space<vmem>>, %arg7: memref<8x32xf32, #tpu.memory_space<vmem>>, %arg8: memref<8x1xf32, #tpu.memory_space<vmem>>, %arg9: memref<8x256xf32, #tpu.memory_space<vmem>>) attributes {dimension_semantics = [#tpu.dimension_semantics<parallel>], iteration_bounds = array<i64: 1>, scalar_prefetch = 0 : i64, scratch_operands = 0 : i64, tpu.core_type = #tpu.core_type<tc>, window_params = [{transform_indices = @transform_0, window_bounds = array<i64: 1, 256>}, {transform_indices = @transform_1, window_bounds = array<i64: 1, 256>}, {pipeline_mode = #tpu.pipeline_mode<synchronous>, transform_indices = @transform_2, window_bounds = array<i64: 8, 16>}, {pipeline_mode = #tpu.pipeline_mode<synchronous>, transform_indices = @transform_3, window_bounds = array<i64: 32, 8>}, {pipeline_mode = #tpu.pipeline_mode<synchronous>, transform_indices = @transform_4, window_bounds = array<i64: 32, 8>}, {pipeline_mode = #tpu.pipeline_mode<synchronous>, transform_indices = @transform_5, window_bounds = array<i64: 32, 1>}, {pipeline_mode = #tpu.pipeline_mode<synchronous>, transform_indices = @transform_6, window_bounds = array<i64: 8, 32>}, {pipeline_mode = #tpu.pipeline_mode<synchronous>, transform_indices = @transform_7, window_bounds = array<i64: 8, 1>}, {transform_indices = @transform_8, window_bounds = array<i64: 8, 256>}]} {
    %c0 = arith.constant 0 : index
    %c0_0 = arith.constant 0 : index
    %0 = vector.load %arg3[%c0, %c0_0] : memref<8x16xf32, #tpu.memory_space<vmem>>, vector<8x16xf32>
    %1 = tpu.iota {dimensions = array<i32: 0>} : vector<16x256xi32>
    %c0_1 = arith.constant 0 : index
    %c0_2 = arith.constant 0 : index
    %2 = vector.load %arg1[%c0_1, %c0_2] : memref<1x256xi32, #tpu.memory_space<vmem>>, vector<1x256xi32>
    %3 = vector.broadcast %2 : vector<1x256xi32> to vector<16x256xi32>
    %4 = arith.cmpi eq, %1, %3 : vector<16x256xi32>
    %5 = arith.extui %4 : vector<16x256xi1> to vector<16x256xi32>
    %6 = arith.sitofp %5 : vector<16x256xi32> to vector<16x256xf32>
    %c0_3 = arith.constant 0 : index
    %c0_4 = arith.constant 0 : index
    %7 = vector.load %arg2[%c0_3, %c0_4] : memref<1x256xi32, #tpu.memory_space<vmem>>, vector<1x256xi32>
    %8 = vector.broadcast %7 : vector<1x256xi32> to vector<16x256xi32>
    %9 = arith.cmpi eq, %1, %8 : vector<16x256xi32>
    %10 = arith.extui %9 : vector<16x256xi1> to vector<16x256xi32>
    %11 = arith.sitofp %10 : vector<16x256xi32> to vector<16x256xf32>
    %cst = arith.constant dense<0.000000e+00> : vector<8x256xf32>
    %12 = tpu.matmul %0, %6, %cst {dimension_numbers = #tpu.dot_dimension_numbers<[1], [0], [0], [1], [0, 0, 1, 1], [], []>} : vector<8x16xf32>, vector<16x256xf32>, vector<8x256xf32> -> vector<8x256xf32>
    %cst_5 = arith.constant dense<0.000000e+00> : vector<8x256xf32>
    %13 = tpu.matmul %0, %11, %cst_5 {dimension_numbers = #tpu.dot_dimension_numbers<[1], [0], [0], [1], [0, 0, 1, 1], [], []>} : vector<8x16xf32>, vector<16x256xf32>, vector<8x256xf32> -> vector<8x256xf32>
    %14 = arith.addf %12, %13 : vector<8x256xf32>
    %15 = arith.subf %12, %13 : vector<8x256xf32>
    %16 = math.absf %15 : vector<8x256xf32>
    %c0_6 = arith.constant 0 : index
    %c0_7 = arith.constant 0 : index
    %17 = vector.load %arg4[%c0_6, %c0_7] : memref<32x8xf32, #tpu.memory_space<vmem>>, vector<32x8xf32>
    %cst_8 = arith.constant dense<0.000000e+00> : vector<32x256xf32>
    %18 = tpu.matmul %17, %14, %cst_8 {dimension_numbers = #tpu.dot_dimension_numbers<[1], [0], [0], [1], [0, 0, 1, 1], [], []>} : vector<32x8xf32>, vector<8x256xf32>, vector<32x256xf32> -> vector<32x256xf32>
    %c0_9 = arith.constant 0 : index
    %c0_10 = arith.constant 0 : index
    %19 = vector.load %arg5[%c0_9, %c0_10] : memref<32x8xf32, #tpu.memory_space<vmem>>, vector<32x8xf32>
    %cst_11 = arith.constant dense<0.000000e+00> : vector<32x256xf32>
    %20 = tpu.matmul %19, %16, %cst_11 {dimension_numbers = #tpu.dot_dimension_numbers<[1], [0], [0], [1], [0, 0, 1, 1], [], []>} : vector<32x8xf32>, vector<8x256xf32>, vector<32x256xf32> -> vector<32x256xf32>
    %21 = arith.addf %18, %20 : vector<32x256xf32>
    %c0_12 = arith.constant 0 : index
    %c0_13 = arith.constant 0 : index
    %22 = vector.load %arg6[%c0_12, %c0_13] : memref<32x1xf32, #tpu.memory_space<vmem>>, vector<32x1xf32>
    %23 = vector.broadcast %22 : vector<32x1xf32> to vector<32x256xf32>
    %24 = arith.addf %21, %23 : vector<32x256xf32>
    %cst_14 = arith.constant 0.000000e+00 : f32
    %25 = vector.broadcast %cst_14 : f32 to vector<32x256xf32>
    %26 = arith.maximumf %24, %25 : vector<32x256xf32>
    %c0_15 = arith.constant 0 : index
    %c0_16 = arith.constant 0 : index
    %27 = vector.load %arg7[%c0_15, %c0_16] : memref<8x32xf32, #tpu.memory_space<vmem>>, vector<8x32xf32>
    %cst_17 = arith.constant dense<0.000000e+00> : vector<8x256xf32>
    %28 = tpu.matmul %27, %26, %cst_17 {dimension_numbers = #tpu.dot_dimension_numbers<[1], [0], [0], [1], [0, 0, 1, 1], [], []>} : vector<8x32xf32>, vector<32x256xf32>, vector<8x256xf32> -> vector<8x256xf32>
    %c0_18 = arith.constant 0 : index
    %c0_19 = arith.constant 0 : index
    %29 = vector.load %arg8[%c0_18, %c0_19] : memref<8x1xf32, #tpu.memory_space<vmem>>, vector<8x1xf32>
    %30 = vector.broadcast %29 : vector<8x1xf32> to vector<8x256xf32>
    %31 = arith.addf %28, %30 : vector<8x256xf32>
    %c0_20 = arith.constant 0 : index
    %c0_21 = arith.constant 0 : index
    %32 = vector.load %arg9[%c0_20, %c0_21] : memref<8x256xf32, #tpu.memory_space<vmem>>, vector<8x256xf32>
    tpu.vector_store %arg9[%c0_20, %c0_21], %31 {strides = array<i32>} : memref<8x256xf32, #tpu.memory_space<vmem>>, vector<8x256xf32>,
    return
  }
  func.func @transform_0(%arg0: i32) -> (i32, i32) {
    %c0_i32 = arith.constant 0 : i32
    %c0_i32_0 = arith.constant 0 : i32
    return %c0_i32, %arg0 : i32, i32
  }
  func.func @transform_1(%arg0: i32) -> (i32, i32) {
    %c0_i32 = arith.constant 0 : i32
    %c0_i32_0 = arith.constant 0 : i32
    return %c0_i32, %arg0 : i32, i32
  }
  func.func @transform_2(%arg0: i32) -> (i32, i32) {
    %c0_i32 = arith.constant 0 : i32
    %c0_i32_0 = arith.constant 0 : i32
    %c0_i32_1 = arith.constant 0 : i32
    return %c0_i32, %c0_i32_0 : i32, i32
  }
  func.func @transform_3(%arg0: i32) -> (i32, i32) {
    %c0_i32 = arith.constant 0 : i32
    %c0_i32_0 = arith.constant 0 : i32
    %c0_i32_1 = arith.constant 0 : i32
    return %c0_i32, %c0_i32_0 : i32, i32
  }
  func.func @transform_4(%arg0: i32) -> (i32, i32) {
    %c0_i32 = arith.constant 0 : i32
    %c0_i32_0 = arith.constant 0 : i32
    %c0_i32_1 = arith.constant 0 : i32
    return %c0_i32, %c0_i32_0 : i32, i32
  }
  func.func @transform_5(%arg0: i32) -> (i32, i32) {
    %c0_i32 = arith.constant 0 : i32
    %c0_i32_0 = arith.constant 0 : i32
    %c0_i32_1 = arith.constant 0 : i32
    return %c0_i32, %c0_i32_0 : i32, i32
  }
  func.func @transform_6(%arg0: i32) -> (i32, i32) {
    %c0_i32 = arith.constant 0 : i32
    %c0_i32_0 = arith.constant 0 : i32
    %c0_i32_1 = arith.constant 0 : i32
    return %c0_i32, %c0_i32_0 : i32, i32
  }
  func.func @transform_7(%arg0: i32) -> (i32, i32) {
    %c0_i32 = arith.constant 0 : i32
    %c0_i32_0 = arith.constant 0 : i32
    %c0_i32_1 = arith.constant 0 : i32
    return %c0_i32, %c0_i32_0 : i32, i32
  }
  func.func @transform_8(%arg0: i32) -> (i32, i32) {
    %c0_i32 = arith.constant 0 : i32
    %c0_i32_0 = arith.constant 0 : i32
    return %c0_i32, %arg0 : i32, i32
  }
}

</mosaic_0001>

<bundles_post_ra>
// kernel: tpu_custom_call.1
= control target key start
LH: loop header
LB: loop body
LE: loop exit
PB: predicated region body
PF: predicated region fallthrough
CT: control target
= control target key end

     0   :  { %v31_v0 = vlaneseq  ;;  %s789_s0 = inlined_call_operand.vmem [shape: s32[1,256], index: 0, kind: input, shape index: {}]   ;;  %s790_s1 = inlined_call_operand.vmem [shape: s32[1,256], index: 1, kind: input, shape index: {}]   ;;  %s791_s2 = inlined_call_operand.vmem [shape: f32[8,16], index: 2, kind: input, shape index: {}]   ;;  %s792_s3 = inlined_call_operand.vmem [shape: f32[32,8], index: 3, kind: input, shape index: {}]   ;;  %s793_s4 = inlined_call_operand.vmem [shape: f32[32,8], index: 4, kind: input, shape index: {}]   ;;  %s794_s5 = inlined_call_operand.vmem [shape: f32[32,1], index: 5, kind: input, shape index: {}]   ;;  %s795_s6 = inlined_call_operand.vmem [shape: f32[8,32], index: 6, kind: input, shape index: {}]   ;;  %s796_s7 = inlined_call_operand.vmem [shape: f32[8,1], index: 7, kind: input, shape index: {}]   ;;  %s797_s8 = inlined_call_operand.hbm [shape: f32[8,256], index: 8, kind: output, shape index: {}]  }
   0x1   :  { %13 = vsyncpa [#allocation3], 0  ;;  %v658_v2 = vmov 0.0   ;;  %v34_v3 = vld [vmem:[%s789_s0] sm:$0x3]  ;;  %vm76_vm12 = vcmask 130048  }
   0x2   :  { %v32_v1 = vshrl.u32 %v31_v0, 7  ;;  %144 = vmatprep.mubr.f32.mxu0 %v658_v2  ;;  %215 = vmatprep.mubr.f32.mxu1 %v658_v2  ;;  %v55_v4 = vld [vmem:[%s790_s1] sm:$0x3]  ;;  %v659_v12 = vmov 1.0|1.0   ;;  %v660_v15 = vmov 0  }
   0x3   :  { %v30_v13 = vld [vmem:[%s791_s2] sm:$0xff]  ;;  %632 = vset.pattern.permute.xlu0 %v660_v15  ;;  %633 = vset.pattern.permute.xlu1 %v660_v15  ;;  %v441_v16 = vld [vmem:[%s794_s5 + $0x10] sm:$0xff]  ;;  %v440_v17 = vld [vmem:[%s794_s5 + $0x8] sm:$0xff]  ;;  %vm236_vm13 = vcmask 64512   ;;  %vm486_vm14 = vcmask 261120   ;;  %s661_s1 = smov [#allocation2]  }
   0x4   :  { %v33_v5 = vadd.s32 8, %v32_v1  ;;  %v41_v6 = vsub.s32 1, %v32_v1  ;;  %v37_v7 = vsub.s32 0, %v32_v1  ;;  %v439_v14 = vld [vmem:[%s794_s5] sm:$0xff]  ;;  %455 = vperm.xlu1 %633, %v441_v16   ;;  %v442_v18 = vld [vmem:[%s794_s5 + $0x18] sm:$0xff]  ;;  %v229_v32 = vld [vmem:[%s792_s3 + $0x8] sm:$0xff] }
   0x5   :  { %445 = vperm.xlu0 %632, %v439_v14   ;;  %v480_v19 = vld [vmem:[%s796_s7] sm:$0xff]  ;;  %v233_v33 = vld [vmem:[%s793_s4 + $0x8] sm:$0xff]  ;;  %v230_v34 = vld [vmem:[%s792_s3 + $0x10] sm:$0xff]  ;;  %s569_s9 = sshll.u32 %s661_s1, 4  ;;  %s570_s9 = int_to_ptr.vmem [resolvable:$true] %s569_s9 }
   0x6   :  { %v42_v8 = vrot.slane %v34_v3, %v41_v6  ;;  %v63_v9 = vrot.slane %v55_v4, %v41_v6  ;;  %v38_v10 = vrot.slane %v34_v3, %v37_v7  ;;  %v59_v11 = vrot.slane %v55_v4, %v37_v7  ;;  %v228_v28 = vld [vmem:[%s792_s3] sm:$0xff]  ;;  %v234_v35 = vld [vmem:[%s793_s4 + $0x10] sm:$0xff]  ;;  %v231_v36 = vld [vmem:[%s792_s3 + $0x18] sm:$0xff]  ;;  %s634_s10 = scalar_lea.vmem %s570_s9, 256  ;;  %p639_p1 = scmp.lt.s32.totalorder %s570_s9, %s570_s9 }
   0x7   :  { %v232_v31 = vld [vmem:[%s793_s4] sm:$0xff]  ;;  %v235_v37 = vld [vmem:[%s793_s4 + $0x18] sm:$0xff]  ;;  %p635_p0 = scmp.ne.s32.totalorder %s570_s9, %s634_s10  ;;  %p640_p2 = scmp.lt.s32.totalorder %s634_s10, %s634_s10 }
   0x8   :  { %vm44_vm0 = vcmp.eq.s32.totalorder %v32_v1, %v42_v8  ;;  %vm46_vm1 = vcmp.eq.s32.totalorder %v33_v5, %v42_v8  ;;  %vm65_vm2 = vcmp.eq.s32.totalorder %v32_v1, %v63_v9  ;;  %vm67_vm3 = vcmp.eq.s32.totalorder %v33_v5, %v63_v9  ;;  %460 = vperm.xlu1 %633, %v442_v18  }
   0x9   :  { %vm604_vm4 = vmpackc.low %vm46_vm1, %vm44_vm0  ;;  %vm43_vm5 = vcmp.eq.s32.totalorder %v32_v1, %v38_v10  ;;  %vm45_vm6 = vcmp.eq.s32.totalorder %v33_v5, %v38_v10  ;;  %vm64_vm7 = vcmp.eq.s32.totalorder %v32_v1, %v59_v11  ;;  %vm66_vm8 = vcmp.eq.s32.totalorder %v33_v5, %v59_v11  ;;  %450 = vperm.xlu0 %632, %v440_v17   ;;  %p641_p3 = por %p640_p2, %p639_p1 }
   0xa   :  { %605 = vmatprep.subr.msk.bf16.mxu0 %vm604_vm4, %v659_v12  ;;  %vm608_vm9 = vmpackc.low %vm67_vm3, %vm65_vm2 }
   0xb   :  { %609 = vmatprep.subr.msk.bf16.mxu1 %vm608_vm9, %v659_v12  ;;  %vm606_vm10 = vmpackc.low %vm45_vm6, %vm43_vm5  ;;  %p642_p4 = pnand %p641_p3, %p635_p0 }
   0xc   :  { %607 = vmatpush1.bf16.msk.msra.mxu0 %vm606_vm10, %v659_v12  ;;  %vm610_vm11 = vmpackc.low %vm66_vm8, %vm64_vm7 }
   0xd   :  { %611 = vmatpush1.bf16.msk.msra.mxu1 %vm610_vm11, %v659_v12  ;;  %483 = vperm.xlu0 %632, %v480_v19  }
   0xf   :  { %589 = vmatmul.mubr.msk.f32.vlgmr.msra.gmra.mrb[0].mxu0 %vm76_vm12, %v30_v13 }
  0x10   :  { %594 = vmatmul.mubr.msk.f32.vlgmr.msra.gmra.mrb[0].mxu1 %vm76_vm12, %v30_v13  ;;  %414 = vmatprep.mubr.f32.mxu0 %v658_v2 }
  0x11   :  { %313 = vmatprep.mubr.f32.mxu1 %v658_v2 }
  0x83   :  { %v456_v58 = vpop.permute.xlu1 %455 }
  0x84   :  { %v446_v40 = vpop.permute.xlu0 %445 }
  0x87   :  { %v461_v12 = vpop.permute.xlu1 %460 }
  0x88   :  { %v451_v51 = vpop.permute.xlu0 %450 }
  0xe2   :  { %v146_v20 = vpop.f32.mrb[0].mxu0 }
  0xe3   :  { %v217_v21 = vpop.f32.mrb[0].mxu1  ;;  %v148_v22 = vpop.f32.mrb[1].mxu0 }
  0xe4   :  { %v222_v23 = vadd.f32 %v217_v21, %v146_v20  ;;  %v224_v24 = vsub.f32 %v146_v20, %v217_v21  ;;  %v219_v25 = vpop.f32.mrb[1].mxu1 }
  0xe5   :  { %v223_v26 = vadd.f32 %v219_v25, %v148_v22  ;;  %v225_v27 = vsub.f32 %v148_v22, %v219_v25  ;;  %v479_v22 = vld [vmem:[%s795_s6] sm:$0xff] }
  0xe6   :  { %v226_v30 = vand.u32 2147483647, %v224_v24 }
  0xe7   :  { %v227_v29 = vand.u32 2147483647, %v225_v27  ;;  %350 = vmatprep.subr.mxu0 %v223_v26 }
  0xe8   :  { %351 = vmatpush1.msra.mxu0 %v222_v23  ;;  %v484_v23 = vpop.permute.xlu0 %483 }
  0xe9   :  { %249 = vmatprep.subr.mxu1 %v227_v29  ;;  %599 = vmatmul.mubr.msk.f32.vlgmr.msra.gmra.mrb[2].mxu0 %vm236_vm13, %v228_v28 }
  0xea   :  { %250 = vmatpush1.msra.mxu1 %v226_v30  ;;  %420 = vmatprep.mubr.f32.mxu0 %v658_v2 }
  0xeb   :  { %595 = vmatmul.mubr.msk.f32.vlgmr.msra.gmra.mrb[2].mxu1 %vm236_vm13, %v232_v31 }
  0xec   :  { %319 = vmatprep.mubr.f32.mxu1 %v658_v2 }
  0xed   :  { %600 = vmatmul.mubr.msk.f32.gmra.mrb[4].mxu0 %vm236_vm13, %v229_v32 }
  0xee   :  { %426 = vmatprep.mubr.f32.mxu0 %v658_v2 }
  0xef   :  { %596 = vmatmul.mubr.msk.f32.gmra.mrb[4].mxu1 %vm236_vm13, %v233_v33 }
  0xf0   :  { %325 = vmatprep.mubr.f32.mxu1 %v658_v2 }
  0xf1   :  { %601 = vmatmul.mubr.msk.f32.gmra.mrb[6].mxu0 %vm236_vm13, %v230_v34 }
  0xf2   :  { %432 = vmatprep.mubr.f32.mxu0 %v658_v2 }
  0xf3   :  { %597 = vmatmul.mubr.msk.f32.gmra.mrb[6].mxu1 %vm236_vm13, %v234_v35 }
  0xf4   :  { %331 = vmatprep.mubr.f32.mxu1 %v658_v2 }
  0xf5   :  { %602 = vmatmul.mubr.msk.f32.gmra.mrb[8].mxu0 %vm236_vm13, %v231_v36 }
  0xf7   :  { %598 = vmatmul.mubr.msk.f32.gmra.mrb[8].mxu1 %vm236_vm13, %v235_v37 }
  0xf8   :  { %554 = vmatprep.mubr.f32.mxu1 %v658_v2 }
 0x1bc   :  { %v416_v38 = vpop.f32.mrb[2].mxu0 }
 0x1bd   :  { %v418_v39 = vpop.f32.mrb[3].mxu0 }
 0x1be   :  { %v315_v41 = vpop.f32.mrb[2].mxu1 }
 0x1bf   :  { %v417_v42 = vadd.f32 %v416_v38, %v315_v41  ;;  %v317_v43 = vpop.f32.mrb[3].mxu1 }
 0x1c0   :  { %v419_v44 = vadd.f32 %v418_v39, %v317_v43  ;;  %v422_v45 = vpop.f32.mrb[4].mxu0 }
 0x1c1   :  { %v424_v46 = vpop.f32.mrb[5].mxu0  ;;  %v463_v48 = vadd.f32 %v446_v40, %v417_v42 }
 0x1c2   :  { %v321_v47 = vpop.f32.mrb[4].mxu1  ;;  %v464_v52 = vadd.f32 %v446_v40, %v419_v44 }
 0x1c3   :  { %v423_v49 = vadd.f32 %v422_v45, %v321_v47  ;;  %v323_v50 = vpop.f32.mrb[5].mxu1  ;;  %v471_v60 = vmax.f32 %v463_v48, 0.0 }
 0x1c4   :  { %v425_v53 = vadd.f32 %v424_v46, %v323_v50  ;;  %v428_v54 = vpop.f32.mrb[6].mxu0  ;;  %v472_v0 = vmax.f32 %v464_v52, 0.0 }
 0x1c5   :  { %v465_v55 = vadd.f32 %v451_v51, %v423_v49  ;;  %v430_v56 = vpop.f32.mrb[7].mxu0 }
 0x1c6   :  { %v466_v57 = vadd.f32 %v451_v51, %v425_v53  ;;  %v327_v59 = vpop.f32.mrb[6].mxu1 }
 0x1c7   :  { %v473_v61 = vmax.f32 %v465_v55, 0.0  ;;  %v429_v62 = vadd.f32 %v428_v54, %v327_v59  ;;  %v329_v63 = vpop.f32.mrb[7].mxu1 }
 0x1c8   :  { %v474_v1 = vmax.f32 %v466_v57, 0.0  ;;  %v431_v2 = vadd.f32 %v430_v56, %v329_v63  ;;  %v434_v3 = vpop.f32.mrb[8].mxu0 }
 0x1c9   :  { %v614_v4 = vpack.c.bf16 %v473_v61, %v471_v60  ;;  %v436_v5 = vpop.f32.mrb[9].mxu0  ;;  %v467_v8 = vadd.f32 %v456_v58, %v429_v62 }
 0x1ca   :  { %v333_v6 = vpop.f32.mrb[8].mxu1  ;;  %v612_v7 = vpack.c.bf16 %v474_v1, %v472_v0  ;;  %v468_v11 = vadd.f32 %v456_v58, %v431_v2 }
 0x1cb   :  { %v435_v9 = vadd.f32 %v434_v3, %v333_v6  ;;  %v335_v10 = vpop.f32.mrb[9].mxu1  ;;  %v475_v16 = vmax.f32 %v467_v8, 0.0 }
 0x1cc   :  { %v437_v13 = vadd.f32 %v436_v5, %v335_v10  ;;  %613 = vmatprep.subr.bf16.mxu1 %v612_v7  ;;  %v476_v18 = vmax.f32 %v468_v11, 0.0 }
 0x1cd   :  { %v469_v14 = vadd.f32 %v461_v12, %v435_v9  ;;  %615 = vmatpush1.bf16.msra.mxu1 %v614_v4 }
 0x1ce   :  { %v470_v15 = vadd.f32 %v461_v12, %v437_v13 }
 0x1cf   :  { %v477_v17 = vmax.f32 %v469_v14, 0.0 }
 0x1d0   :  { %v478_v19 = vmax.f32 %v470_v15, 0.0 }
 0x1d1   :  { %v618_v20 = vpack.c.bf16 %v477_v17, %v475_v16 }
 0x1d2   :  { %v616_v21 = vpack.c.bf16 %v478_v19, %v476_v18 }
 0x1d4   :  { %617 = vmatprep.subr.bf16.mxu1 %v616_v21 }
 0x1d5   :  { %619 = vmatpush1.bf16.msra.mxu1 %v618_v20 }
 0x1d8   :  { %603 = vmatmul.mubr.msk.f32.vlgmr.msra.gmra.mrb[10].mxu1 %vm486_vm14, %v479_v22 }
 0x2ab   :  { %v556_v24 = vpop.f32.mrb[10].mxu1 }
 0x2ac   :  { %v557_v25 = vadd.f32 %v556_v24, %v484_v23  ;;  %v558_v26 = vpop.f32.mrb[11].mxu1 }
 0x2ad   :  { %v559_v27 = vadd.f32 %v558_v26, %v484_v23 }
 0x2ae   :  { %561 = vst [vmem:[#allocation2] sm:$0xff] %v557_v25 }
 0x2af   :  { %562 = vst [vmem:[#allocation2 + $0x8] sm:$0xff] %v559_v27 }
 0x2b0   :  { %645 = shalt.err (!%p642_p4)
}
 0x2b1   :  { %s646_s12 = scalar_lea.hbm %s797_s8, 256 }
 0x2b2   :  { %p647_p5 = scmp.ne.s32.totalorder %s797_s8, %s646_s12  ;;  %p650_p6 = scmp.lt.u32.totalorder %s646_s12, %s797_s8 }
 0x2b4   :  { %p652_p7 = pnand %p650_p6, %p647_p5 }
 0x2b6   :  { %655 = shalt.err (!%p652_p7)
}
 0x2b7   :  { %572 = dma.vmem_to_hbm [thread:$0]  %s570_s9, 256, %s797_s8, [#allocation3]  }
 0x2b8   :  { %656 = dma.done.wait [#allocation3], 256  }
 0x2b9   :  { %657 = vsyncadd [#allocation3], 4294967040 }
 0x2ba   :  { %576 = vsyncpa [#allocation3], 1 }

</bundles_post_ra>
